<compile_context>
chip_gen: v6e
topology: v6e:2x2x1
jax: 0.10.0
libtpu: 0.0.40
codegen_flags: <defaults>
</compile_context>

<pallas_src>
import math

import jax
import jax.numpy as jnp
from jax.experimental import pallas as pl
from jax.experimental.pallas import tpu as pltpu

# ---- Module configuration (small, deterministic) ----
BATCH = 2
SEQ = 8
HIDDEN = 32
VOCAB = 128                 # multiple of 128 -> lane-dense output stores
EPS = 1e-12                 # F.normalize default eps


def normhead_kernel(x_ref, w_ref, o_ref):
    x = x_ref[...]                                       # (N, H)   N = B*T
    w = w_ref[...]                                       # (V, H)   native layout

    # Per-vocab-row squared L2 norm: lane (last-dim) reduction on (V, H).
    ss = jnp.sum(w * w, axis=-1, keepdims=True)          # (V, 1)
    # 1 / max(||w||, EPS) via a single EUP rsqrt (EPS^2 is a normal f32).
    inv = jax.lax.rsqrt(jnp.maximum(ss, EPS * EPS))      # (V, 1)

    # Row-normalize the small weight tile (broadcast multiply), then one MXU
    # NT matmul: x (N,H) contracted with w_n (V,H) along H -> (N, V).
    w_n = w * inv
    y = jax.lax.dot_general(
        x, w_n,
        dimension_numbers=(((1,), (1,)), ((), ())),
        preferred_element_type=jnp.float32)              # (N, V)
    o_ref[...] = y.astype(o_ref.dtype)


@jax.jit
def normhead_forward(hidden_states, weight):
    """hidden_states: (..., H); weight: (V, H) exactly like the PyTorch param."""
    v, h = weight.shape
    lead = hidden_states.shape[:-1]
    n = math.prod(lead) if lead else 1

    x_flat = hidden_states.reshape(n, h)                 # fold batch+seq -> one slab

    out_flat = pl.pallas_call(
        normhead_kernel,
        out_shape=jax.ShapeDtypeStruct((n, v), hidden_states.dtype),
        # No grid: whole arrays resident in VMEM for a single invocation.
        in_specs=[pl.BlockSpec(memory_space=pltpu.MemorySpace.VMEM),
                  pl.BlockSpec(memory_space=pltpu.MemorySpace.VMEM)],
        out_specs=pl.BlockSpec(memory_space=pltpu.MemorySpace.VMEM),
    )(x_flat, weight)

    return out_flat.reshape(*lead, v)


# ---------------- pure-JAX reference (mirrors the PyTorch forward) ----------------
def reference(hidden_states, weight):
    norm = jnp.sqrt(jnp.sum(weight * weight, axis=-1, keepdims=True))
    w_n = weight / jnp.maximum(norm, EPS)                # F.normalize(weight), dim=-1
    return hidden_states @ w_n.T


if __name__ == "__main__":
    key = jax.random.PRNGKey(0)
    k_x, k_w = jax.random.split(key, 2)

    hidden_states = jax.random.normal(k_x, (BATCH, SEQ, HIDDEN), jnp.float32)

    # kaiming_uniform_(a=sqrt(5)) on a (V, H) weight -> U(-1/sqrt(H), 1/sqrt(H))
    bound = 1.0 / math.sqrt(HIDDEN)
    weight = jax.random.uniform(k_w, (VOCAB, HIDDEN), jnp.float32,
                                minval=-bound, maxval=bound)

    out = jax.block_until_ready(normhead_forward(hidden_states, weight))
    ref = reference(hidden_states, weight)

    assert out.shape == (BATCH, SEQ, VOCAB), out.shape
    err = float(jnp.max(jnp.abs(out - ref)))
    assert jnp.allclose(out, ref, atol=1e-4, rtol=1e-4), f"max abs err {err}"
    print("KERNEL_OK")
</pallas_src>

<mosaic_0001>
module attributes {stable_mosaic.version = 11 : i64} {
  func.func @normhead_kernel(%arg0: memref<16x32xf32, #tpu.memory_space<vmem>>, %arg1: memref<128x32xf32, #tpu.memory_space<vmem>>, %arg2: memref<16x128xf32, #tpu.memory_space<vmem>>) attributes {dimension_semantics = [], scalar_prefetch = 0 : i64, scratch_operands = 0 : i64, tpu.core_type = #tpu.core_type<tc>} {
    %c0 = arith.constant 0 : index
    %c0_0 = arith.constant 0 : index
    %0 = vector.load %arg0[%c0, %c0_0] : memref<16x32xf32, #tpu.memory_space<vmem>>, vector<16x32xf32>
    %c0_1 = arith.constant 0 : index
    %c0_2 = arith.constant 0 : index
    %1 = vector.load %arg1[%c0_1, %c0_2] : memref<128x32xf32, #tpu.memory_space<vmem>>, vector<128x32xf32>
    %2 = arith.mulf %1, %1 : vector<128x32xf32>
    %cst = arith.constant dense<0.000000e+00> : vector<128xf32>
    %3 = vector.multi_reduction <add>, %2, %cst [1] : vector<128x32xf32> to vector<128xf32>
    %4 = vector.shape_cast %3 : vector<128xf32> to vector<128x1xf32>
    %cst_3 = arith.constant 1.000000e-24 : f32
    %5 = vector.broadcast %cst_3 : f32 to vector<128x1xf32>
    %6 = arith.maximumf %4, %5 : vector<128x1xf32>
    %7 = math.rsqrt %6 : vector<128x1xf32>
    %8 = vector.broadcast %7 : vector<128x1xf32> to vector<128x32xf32>
    %9 = arith.mulf %1, %8 : vector<128x32xf32>
    %cst_4 = arith.constant dense<0.000000e+00> : vector<16x128xf32>
    %10 = tpu.matmul %0, %9, %cst_4 {dimension_numbers = #tpu.dot_dimension_numbers<[1], [1], [0], [0], [0, 0, 1, 0], [], []>} : vector<16x32xf32>, vector<128x32xf32>, vector<16x128xf32> -> vector<16x128xf32>
    %c0_5 = arith.constant 0 : index
    %c0_6 = arith.constant 0 : index
    %11 = vector.load %arg2[%c0_5, %c0_6] : memref<16x128xf32, #tpu.memory_space<vmem>>, vector<16x128xf32>
    tpu.vector_store %arg2[%c0_5, %c0_6], %10 {strides = array<i32>} : memref<16x128xf32, #tpu.memory_space<vmem>>, vector<16x128xf32>,
    return
  }
}

</mosaic_0001>

<bundles_post_ra>
// kernel: normhead_forward.1
= control target key start
LH: loop header
LB: loop body
LE: loop exit
PB: predicated region body
PF: predicated region fallthrough
CT: control target
= control target key end

     0   :  { %vm46_vm0 = vcmask 261120   ;;  %s623_s0 = inlined_call_operand.vmem [shape: f32[16,32], index: 0, kind: input, shape index: {}]   ;;  %s624_s1 = inlined_call_operand.vmem [shape: f32[128,32], index: 1, kind: input, shape index: {}]   ;;  %s625_s2 = inlined_call_operand.hbm [shape: f32[16,128], index: 2, kind: output, shape index: {}]  }
   0x1   :  { %v439_v0 = vld [vmem:[%s624_s1 + $0x78] sm:$0xff]  ;;  %v444_v1 = vld [vmem:[%s624_s1 + $0x70] sm:$0xff]  ;;  %v449_v2 = vld [vmem:[%s624_s1 + $0x68] sm:$0xff] }
   0x2   :  { %v45_v3 = vmul.f32 %v439_v0, %v439_v0  ;;  %v44_v4 = vmul.f32 %v444_v1, %v444_v1  ;;  %v43_v5 = vmul.f32 %v449_v2, %v449_v2  ;;  %v460_v6 = vld [vmem:[%s624_s1 + $0x60] sm:$0xff]  ;;  %v467_v8 = vld [vmem:[%s624_s1 + $0x58] sm:$0xff]  ;;  %v472_v9 = vld [vmem:[%s624_s1 + $0x50] sm:$0xff] }
   0x3   :  { %v42_v7 = vmul.f32 %v460_v6, %v460_v6  ;;  %v41_v14 = vmul.f32 %v467_v8, %v467_v8  ;;  %v40_v15 = vmul.f32 %v472_v9, %v472_v9 }
   0x4   :  { %v92_v10 = vsel %vm46_vm0, %v45_v3, 0.0  ;;  %v86_v11 = vsel %vm46_vm0, %v43_v5, 0.0  ;;  %v89_v12 = vsel %vm46_vm0, %v44_v4, 0.0 }
   0x5   :  { %93 = vadd.xlane.f32.xlu0 %v92_v10  ;;  %87 = vadd.xlane.f32.xlu1 %v86_v11  ;;  %v83_v13 = vsel %vm46_vm0, %v42_v7, 0.0 }
   0x6   :  { %7 = vsyncpa [#allocation3], 0  ;;  %v485_v16 = vld [vmem:[%s624_s1 + $0x48] sm:$0xff]  ;;  %v490_v17 = vld [vmem:[%s624_s1 + $0x40] sm:$0xff]  ;;  %v80_v18 = vsel %vm46_vm0, %v41_v14, 0.0  ;;  %v77_v19 = vsel %vm46_vm0, %v40_v15, 0.0 }
   0x7   :  { %v39_v20 = vmul.f32 %v485_v16, %v485_v16  ;;  %v38_v21 = vmul.f32 %v490_v17, %v490_v17  ;;  %v501_v22 = vld [vmem:[%s624_s1 + $0x38] sm:$0xff]  ;;  %v506_v23 = vld [vmem:[%s624_s1 + $0x30] sm:$0xff]  ;;  %v517_v28 = vld [vmem:[%s624_s1 + $0x28] sm:$0xff]  ;;  %s418_s16 = smov [#allocation2]  }
   0x8   :  { %v37_v26 = vmul.f32 %v501_v22, %v501_v22  ;;  %v36_v27 = vmul.f32 %v506_v23, %v506_v23  ;;  %v522_v29 = vld [vmem:[%s624_s1 + $0x20] sm:$0xff]  ;;  %v35_v32 = vmul.f32 %v517_v28, %v517_v28  ;;  %v533_v34 = vld [vmem:[%s624_s1 + $0x18] sm:$0xff]  ;;  %v538_v35 = vld [vmem:[%s624_s1 + $0x10] sm:$0xff]  ;;  %s279_s17 = sshll.u32 %s418_s16, 4  ;;  %s280_s17 = int_to_ptr.vmem [resolvable:$true] %s279_s17 }
   0x9   :  { %90 = vadd.xlane.f32.xlu0 %v89_v12  ;;  %84 = vadd.xlane.f32.xlu1 %v83_v13  ;;  %v74_v24 = vsel %vm46_vm0, %v39_v20, 0.0  ;;  %v71_v25 = vsel %vm46_vm0, %v38_v21, 0.0  ;;  %v34_v33 = vmul.f32 %v522_v29, %v522_v29  ;;  %v33_v38 = vmul.f32 %v533_v34, %v533_v34  ;;  %v549_v40 = vld [vmem:[%s624_s1 + $0x8] sm:$0xff]  ;;  %v554_v41 = vld [vmem:[%s624_s1] sm:$0xff]  ;;  %s396_s18 = scalar_lea.vmem %s280_s17, 256  ;;  %p401_p1 = scmp.lt.s32.totalorder %s280_s17, %s280_s17 }
   0xa   :  { %v68_v30 = vsel %vm46_vm0, %v37_v26, 0.0  ;;  %v65_v31 = vsel %vm46_vm0, %v36_v27, 0.0  ;;  %v62_v36 = vsel %vm46_vm0, %v35_v32, 0.0  ;;  %v32_v39 = vmul.f32 %v538_v35, %v538_v35  ;;  %v12_v48 = vld [vmem:[%s623_s0] sm:$0xff]  ;;  %p397_p0 = scmp.ne.s32.totalorder %s280_s17, %s396_s18  ;;  %p402_p2 = scmp.lt.s32.totalorder %s396_s18, %s396_s18 }
   0xb   :  { %v59_v37 = vsel %vm46_vm0, %v34_v33, 0.0  ;;  %v56_v42 = vsel %vm46_vm0, %v33_v38, 0.0  ;;  %v31_v44 = vmul.f32 %v549_v40, %v549_v40  ;;  %v30_v45 = vmul.f32 %v554_v41, %v554_v41  ;;  %358 = vmatprep.mubr.msk.f32.mxu0 %vm46_vm0, %v12_v48 }
   0xc   :  { %v53_v43 = vsel %vm46_vm0, %v32_v39, 0.0  ;;  %p403_p3 = por %p402_p2, %p401_p1 }
   0xd   :  { %81 = vadd.xlane.f32.xlu0 %v80_v18  ;;  %78 = vadd.xlane.f32.xlu1 %v77_v19  ;;  %v50_v46 = vsel %vm46_vm0, %v31_v44, 0.0  ;;  %v47_v47 = vsel %vm46_vm0, %v30_v45, 0.0 }
   0xe   :  { %p404_p4 = pnand %p403_p3, %p397_p0 }
  0x11   :  { %75 = vadd.xlane.f32.xlu0 %v74_v24  ;;  %72 = vadd.xlane.f32.xlu1 %v71_v25 }
  0x15   :  { %69 = vadd.xlane.f32.xlu0 %v68_v30  ;;  %66 = vadd.xlane.f32.xlu1 %v65_v31 }
  0x19   :  { %63 = vadd.xlane.f32.xlu0 %v62_v36  ;;  %60 = vadd.xlane.f32.xlu1 %v59_v37 }
  0x1d   :  { %57 = vadd.xlane.f32.xlu0 %v56_v42  ;;  %54 = vadd.xlane.f32.xlu1 %v53_v43 }
  0x21   :  { %51 = vadd.xlane.f32.xlu0 %v50_v46  ;;  %48 = vadd.xlane.f32.xlu1 %v47_v47 }
  0x8e   :  { %v94_v49 = vpop.xlane.xlu0 %93  ;;  %v88_v50 = vpop.xlane.xlu1 %87 }
  0x8f   :  { %v110_v51 = vmax.f32 %v94_v49, 1e-24  ;;  %v108_v52 = vmax.f32 %v88_v50, 1e-24 }
  0x91   :  { %364 = vrsqrt.f32 %v110_v51 }
  0x92   :  { %v91_v53 = vpop.xlane.xlu0 %90  ;;  %v85_v54 = vpop.xlane.xlu1 %84  ;;  %366 = vrsqrt.f32 %v108_v52 }
  0x93   :  { %v109_v55 = vmax.f32 %v91_v53, 1e-24  ;;  %v107_v56 = vmax.f32 %v85_v54, 1e-24 }
  0x95   :  { %368 = vrsqrt.f32 %v109_v55 }
  0x96   :  { %v82_v57 = vpop.xlane.xlu0 %81  ;;  %370 = vrsqrt.f32 %v107_v56  ;;  %v79_v59 = vpop.xlane.xlu1 %78 }
  0x97   :  { %v106_v58 = vmax.f32 %v82_v57, 1e-24  ;;  %v105_v60 = vmax.f32 %v79_v59, 1e-24 }
  0x99   :  { %372 = vrsqrt.f32 %v106_v58 }
  0x9a   :  { %v76_v61 = vpop.xlane.xlu0 %75  ;;  %374 = vrsqrt.f32 %v105_v60  ;;  %v73_v5 = vpop.xlane.xlu1 %72 }
  0x9b   :  { %v104_v3 = vmax.f32 %v76_v61, 1e-24  ;;  %v103_v12 = vmax.f32 %v73_v5, 1e-24 }
  0x9d   :  { %376 = vrsqrt.f32 %v104_v3 }
  0x9e   :  { %v365_v62 = vpop.eup %364  ;;  %v70_v14 = vpop.xlane.xlu0 %69  ;;  %378 = vrsqrt.f32 %v103_v12 }
  0x9f   :  { %v142_v63 = vmul.f32 %v365_v62, %v439_v0  ;;  %v367_v4 = vpop.eup %366  ;;  %v102_v15 = vmax.f32 %v70_v14, 1e-24  ;;  %v67_v19 = vpop.xlane.xlu1 %66 }
  0xa0   :  { %v140_v11 = vmul.f32 %v367_v4, %v449_v2  ;;  %v101_v2 = vmax.f32 %v67_v19, 1e-24 }
  0xa1   :  { %326 = vmatprep.subr.msk.mxu0 %vm46_vm0, %v142_v63  ;;  %380 = vrsqrt.f32 %v102_v15 }
  0xa2   :  { %v369_v7 = vpop.eup %368  ;;  %327 = vmatpush3.xpose.msk.msra.mxu0 %vm46_vm0, %v142_v63  ;;  %v64_v21 = vpop.xlane.xlu0 %63  ;;  %382 = vrsqrt.f32 %v101_v2 }
  0xa3   :  { %v141_v10 = vmul.f32 %v369_v7, %v444_v1  ;;  %v371_v13 = vpop.eup %370  ;;  %v100_v24 = vmax.f32 %v64_v21, 1e-24  ;;  %v61_v26 = vpop.xlane.xlu1 %60 }
  0xa4   :  { %v139_v0 = vmul.f32 %v371_v13, %v460_v6  ;;  %v99_v27 = vmax.f32 %v61_v26, 1e-24 }
  0xa5   :  { %328 = vmatprep.subr.msk.mxu0 %vm46_vm0, %v141_v10  ;;  %384 = vrsqrt.f32 %v100_v24 }
  0xa6   :  { %329 = vmatpush3.xpose.msk.msra.mxu0 %vm46_vm0, %v141_v10  ;;  %v373_v18 = vpop.eup %372  ;;  %v58_v31 = vpop.xlane.xlu0 %57  ;;  %386 = vrsqrt.f32 %v99_v27 }
  0xa7   :  { %330 = vmatprep.subr.msk.mxu0 %vm46_vm0, %v140_v11  ;;  %v138_v1 = vmul.f32 %v373_v18, %v467_v8  ;;  %v375_v20 = vpop.eup %374  ;;  %v98_v32 = vmax.f32 %v58_v31, 1e-24  ;;  %v55_v36 = vpop.xlane.xlu1 %54 }
  0xa8   :  { %v137_v6 = vmul.f32 %v375_v20, %v472_v9  ;;  %v97_v37 = vmax.f32 %v55_v36, 1e-24 }
  0xa9   :  { %388 = vrsqrt.f32 %v98_v32 }
  0xaa   :  { %331 = vmatpush3.xpose.msk.msra.mxu0 %vm46_vm0, %v140_v11  ;;  %v377_v25 = vpop.eup %376  ;;  %v52_v39 = vpop.xlane.xlu0 %51  ;;  %390 = vrsqrt.f32 %v97_v37 }
  0xab   :  { %332 = vmatprep.subr.msk.mxu0 %vm46_vm0, %v139_v0  ;;  %v136_v8 = vmul.f32 %v377_v25, %v485_v16  ;;  %v379_v30 = vpop.eup %378  ;;  %v96_v42 = vmax.f32 %v52_v39, 1e-24  ;;  %v49_v44 = vpop.xlane.xlu1 %48 }
  0xac   :  { %v135_v9 = vmul.f32 %v379_v30, %v490_v17  ;;  %v95_v45 = vmax.f32 %v49_v44, 1e-24 }
  0xad   :  { %392 = vrsqrt.f32 %v96_v42 }
  0xae   :  { %333 = vmatpush3.xpose.msk.msra.mxu0 %vm46_vm0, %v139_v0  ;;  %v381_v33 = vpop.eup %380  ;;  %394 = vrsqrt.f32 %v95_v45 }
  0xaf   :  { %334 = vmatprep.subr.msk.mxu0 %vm46_vm0, %v138_v1  ;;  %v134_v16 = vmul.f32 %v381_v33, %v501_v22  ;;  %v383_v38 = vpop.eup %382 }
  0xb0   :  { %v133_v17 = vmul.f32 %v383_v38, %v506_v23 }
  0xb2   :  { %335 = vmatpush3.xpose.msk.msra.mxu0 %vm46_vm0, %v138_v1  ;;  %v385_v43 = vpop.eup %384 }
  0xb3   :  { %336 = vmatprep.subr.msk.mxu0 %vm46_vm0, %v137_v6  ;;  %v132_v22 = vmul.f32 %v385_v43, %v517_v28  ;;  %v387_v46 = vpop.eup %386 }
  0xb4   :  { %v131_v47 = vmul.f32 %v387_v46, %v522_v29 }
  0xb6   :  { %337 = vmatpush3.xpose.msk.msra.mxu0 %vm46_vm0, %v137_v6  ;;  %v389_v23 = vpop.eup %388 }
  0xb7   :  { %338 = vmatprep.subr.msk.mxu0 %vm46_vm0, %v136_v8  ;;  %v130_v48 = vmul.f32 %v389_v23, %v533_v34  ;;  %v391_v49 = vpop.eup %390 }
  0xb8   :  { %v129_v28 = vmul.f32 %v391_v49, %v538_v35  ;;  %v13_v35 = vld [vmem:[%s623_s0 + $0x8] sm:$0xff] }
  0xba   :  { %339 = vmatpush3.xpose.msk.msra.mxu0 %vm46_vm0, %v136_v8  ;;  %v393_v50 = vpop.eup %392 }
  0xbb   :  { %340 = vmatprep.subr.msk.mxu0 %vm46_vm0, %v135_v9  ;;  %v128_v29 = vmul.f32 %v393_v50, %v549_v40  ;;  %v395_v51 = vpop.eup %394 }
  0xbc   :  { %v127_v34 = vmul.f32 %v395_v51, %v554_v41 }
  0xbe   :  { %341 = vmatpush3.xpose.msk.msra.mxu0 %vm46_vm0, %v135_v9 }
  0xbf   :  { %342 = vmatprep.subr.msk.mxu0 %vm46_vm0, %v134_v16 }
  0xc2   :  { %343 = vmatpush3.xpose.msk.msra.mxu0 %vm46_vm0, %v134_v16 }
  0xc3   :  { %344 = vmatprep.subr.msk.mxu0 %vm46_vm0, %v133_v17 }
  0xc6   :  { %345 = vmatpush3.xpose.msk.msra.mxu0 %vm46_vm0, %v133_v17 }
  0xc7   :  { %346 = vmatprep.subr.msk.mxu0 %vm46_vm0, %v132_v22 }
  0xca   :  { %347 = vmatpush3.xpose.msk.msra.mxu0 %vm46_vm0, %v132_v22 }
  0xcb   :  { %348 = vmatprep.subr.msk.mxu0 %vm46_vm0, %v131_v47 }
  0xce   :  { %349 = vmatpush3.xpose.msk.msra.mxu0 %vm46_vm0, %v131_v47 }
  0xcf   :  { %350 = vmatprep.subr.msk.mxu0 %vm46_vm0, %v130_v48 }
  0xd2   :  { %351 = vmatpush3.xpose.msk.msra.mxu0 %vm46_vm0, %v130_v48 }
  0xd3   :  { %352 = vmatprep.subr.msk.mxu0 %vm46_vm0, %v129_v28 }
  0xd6   :  { %353 = vmatpush3.xpose.msk.msra.mxu0 %vm46_vm0, %v129_v28 }
  0xd7   :  { %354 = vmatprep.subr.msk.mxu0 %vm46_vm0, %v128_v29 }
  0xda   :  { %355 = vmatpush3.xpose.msk.msra.mxu0 %vm46_vm0, %v128_v29 }
  0xdb   :  { %356 = vmatprep.subr.msk.mxu0 %vm46_vm0, %v127_v34 }
  0xde   :  { %357 = vmatpush3.xpose.msk.msra.mxu0 %vm46_vm0, %v127_v34 }
  0xe1   :  { %359 = vmatmul.mubr.msk.f32.vlgmr.msra.gmra.mxu0 %vm46_vm0, %v13_v35 }
 0x1a1   :  { %v360_v40 = vpop.f32.mrf.mxu0 }
 0x1a2   :  { %273 = vst [vmem:[#allocation2 + $0x8] sm:$0xff] %v360_v40 }
 0x1a3   :  { %v263_v52 = vpop.f32.mrf.mxu0 }
 0x1a4   :  { %272 = vst [vmem:[#allocation2] sm:$0xff] %v263_v52 }
 0x1a5   :  { %407 = shalt.err (!%p404_p4)
}
 0x1a6   :  { %s419_s19 = smov 128   ;;  %s420_s20 = smov 8  }
 0x1a7   :  { %285 = dma.vmem_to_hbm [thread:$0]  %s280_s17, 256, %s625_s2, [#allocation3], %s419_s19, %s419_s19, %s420_s20  }
 0x1a8   :  { %416 = dma.done.wait [#allocation3], 256  }
 0x1a9   :  { %417 = vsyncadd [#allocation3], 4294967040 }
 0x1aa   :  { %289 = vsyncpa [#allocation3], 1 }

</bundles_post_ra>
